<compile_context>
chip_gen: v7x
topology: tpu7x:2x2x1
jax: 0.10.0
libtpu: 0.0.40
codegen_flags: <defaults>
</compile_context>

<pallas_src>
import functools

import jax
import jax.numpy as jnp
from jax.experimental import pallas as pl
from jax.experimental.pallas import tpu as pltpu


def _round_up(a, b):
    return ((a + b - 1) // b) * b


def _round_down(a, b):
    return (a // b) * b


def _gap_kernel(x_ref, o_ref, acc_ref, *, inv_hw, hw, tile_hw, mask_tail):
    # x_ref:   (tile_r, tile_hw) input block in VMEM
    # o_ref:   (tile_r, 1) output block (resident across the reduction axis)
    # acc_ref: (tile_r, 128) lane-dense f32 accumulator scratch
    k = pl.program_id(1)

    @pl.when(k == 0)
    def _():
        acc_ref[...] = jnp.zeros_like(acc_ref)

    x = x_ref[...].astype(jnp.float32)

    if mask_tail:
        # The last k block extends past the true hw; its trailing lanes are
        # unspecified garbage -> zero them before accumulating.
        lane = jax.lax.broadcasted_iota(jnp.int32, x.shape, 1)
        limit = hw - k * tile_hw
        x = jnp.where(lane < limit, x, 0.0)

    full = tile_hw // 128
    rem = tile_hw % 128

    if full > 0:
        # Pure full-vreg VPU adds over aligned 128-lane slices: no per-step
        # XLU cross-lane reduce in the inner loop.
        s = x[:, 0:128]
        for g in range(1, full):
            s = s + x[:, g * 128:(g + 1) * 128]
        acc_ref[...] += s
    if rem > 0:
        # Ragged trailing chunk (only when tile_hw == hw is not a multiple of
        # 128): fold it into lane 0 with a single cross-lane reduce.
        tail = jnp.sum(x[:, full * 128:], axis=-1, keepdims=True)
        acc_ref[:, 0:1] += tail

    @pl.when(k == pl.num_programs(1) - 1)
    def _():
        row_sum = jnp.sum(acc_ref[...], axis=-1, keepdims=True)
        o_ref[...] = (row_sum * inv_hw).astype(o_ref.dtype)


def global_avg_pool(x, *, tile_budget_bytes=8 * 1024 * 1024):
    """x: (N, C, H, W) -> (N, C), mean over H and W."""
    N, C, H, W = x.shape
    rows = N * C
    hw = H * W
    x2 = x.reshape(rows, hw)            # zero-copy view of the NCHW buffer

    itemsize = x.dtype.itemsize
    sublane = max(8, 32 // itemsize)    # 8 f32 / 16 bf16 / 32 int8-fp8
    max_tile_elems = max(tile_budget_bytes // itemsize, sublane * 128)

    # ---- reduction (H*W) axis tiling -------------------------------------
    HW_LANE_CAP = 4096                  # bounds the unrolled per-step adds
    if hw <= min(HW_LANE_CAP, max_tile_elems // sublane):
        tile_hw = hw                    # full-dim block: exempt from 128 rule
        mask_tail = False
    else:
        tile_hw_max = max(128, min(HW_LANE_CAP,
                                   _round_down(max_tile_elems // sublane, 128)))
        n_hw = pl.cdiv(hw, tile_hw_max)
        tile_hw = _round_up(pl.cdiv(hw, n_hw), 128)   # balanced chunks
        tile_hw = min(tile_hw, _round_down(hw, 128))  # never exceed the array
        mask_tail = (hw % tile_hw != 0)
    grid_hw = pl.cdiv(hw, tile_hw)

    # ---- row (N*C) axis tiling -------------------------------------------
    ROW_CAP = 4096                      # bounds the (tile_r, 128) accumulator
    tile_r_max = max(sublane,
                     min(_round_down(max_tile_elems // tile_hw, sublane),
                         ROW_CAP))
    n_r = pl.cdiv(rows, tile_r_max)
    if n_r == 1 and rows > sublane:
        n_r = 2                         # v7x: keep the 2nd TensorCore busy
    tile_r = _round_up(pl.cdiv(rows, n_r), sublane)
    if tile_r >= rows:
        tile_r = rows                   # full-dim block: exempt from 8 rule
    grid_r = pl.cdiv(rows, tile_r)

    kernel = functools.partial(_gap_kernel, inv_hw=1.0 / hw, hw=hw,
                               tile_hw=tile_hw, mask_tail=mask_tail)

    out = pl.pallas_call(
        kernel,
        out_shape=jax.ShapeDtypeStruct((rows, 1), x.dtype),
        grid_spec=pltpu.PrefetchScalarGridSpec(
            num_scalar_prefetch=0,
            grid=(grid_r, grid_hw),
            in_specs=[pl.BlockSpec((tile_r, tile_hw), lambda i, k: (i, k))],
            out_specs=pl.BlockSpec((tile_r, 1), lambda i, k: (i, 0)),
            scratch_shapes=[pltpu.VMEM((tile_r, 128), jnp.float32)],
        ),
        compiler_params=pltpu.CompilerParams(
            dimension_semantics=("parallel", "arbitrary"),
            vmem_limit_bytes=48 * 1024 * 1024,
        ),
    )(x2)

    # TODO(synk): for hw < 128 (classic 7x7/8x8 final pools) pack g = 128 // hw
    # rows per 128-lane group (free reshape) + a segmented in-kernel reduce to
    # recover the lane-sparse bandwidth; not needed for these sizes.
    return out.reshape(N, C)


if __name__ == "__main__":
    key = jax.random.PRNGKey(0)
    x = jax.random.normal(key, (2, 4, 16, 16), dtype=jnp.float32)

    y = global_avg_pool(x)
    jax.block_until_ready(y)

    # sanity check against plain JAX reference
    y_ref = jnp.mean(x, axis=(-2, -1))
    assert y.shape == (2, 4)
    assert jnp.allclose(y, y_ref, atol=1e-5, rtol=1e-5)

    print("KERNEL_OK")
</pallas_src>

<mosaic_0001>
module attributes {stable_mosaic.version = 11 : i64} {
  func.func @_gap_kernel(%arg0: i32, %arg1: i32, %arg2: memref<8x256xf32, #tpu.memory_space<vmem>>, %arg3: memref<8x1xf32, #tpu.memory_space<vmem>>, %arg4: memref<8x128xf32, #tpu.memory_space<vmem>>) attributes {dimension_semantics = [#tpu.dimension_semantics<parallel>, #tpu.dimension_semantics<arbitrary>], iteration_bounds = array<i64: 1, 1>, scalar_prefetch = 0 : i64, scratch_operands = 1 : i64, tpu.core_type = #tpu.core_type<tc>, window_params = [{transform_indices = @transform_0, window_bounds = array<i64: 8, 256>}, {transform_indices = @transform_1, window_bounds = array<i64: 8, 1>}]} {
    %c0_i32 = arith.constant 0 : i32
    %0 = arith.cmpi eq, %arg1, %c0_i32 : i32
    %1 = arith.extui %0 : i1 to i32
    %c0_i32_0 = arith.constant 0 : i32
    %2 = arith.cmpi ne, %1, %c0_i32_0 : i32
    scf.if %2 {
      %cst = arith.constant 0.000000e+00 : f32
      %13 = vector.broadcast %cst : f32 to vector<8x128xf32>
      %c0_8 = arith.constant 0 : index
      %c0_9 = arith.constant 0 : index
      %14 = vector.load %arg4[%c0_8, %c0_9] : memref<8x128xf32, #tpu.memory_space<vmem>>, vector<8x128xf32>
      tpu.vector_store %arg4[%c0_8, %c0_9], %13 {strides = array<i32>} : memref<8x128xf32, #tpu.memory_space<vmem>>, vector<8x128xf32>,
    } else {
    }
    %c0 = arith.constant 0 : index
    %c0_1 = arith.constant 0 : index
    %3 = vector.load %arg2[%c0, %c0_1] : memref<8x256xf32, #tpu.memory_space<vmem>>, vector<8x256xf32>
    %4 = vector.extract_strided_slice %3 {offsets = [0, 0], sizes = [8, 128], strides = [1, 1]} : vector<8x256xf32> to vector<8x128xf32>
    %5 = vector.extract_strided_slice %3 {offsets = [0, 128], sizes = [8, 128], strides = [1, 1]} : vector<8x256xf32> to vector<8x128xf32>
    %6 = arith.addf %4, %5 : vector<8x128xf32>
    %c0_2 = arith.constant 0 : index
    %c0_3 = arith.constant 0 : index
    %7 = vector.load %arg4[%c0_2, %c0_3] : memref<8x128xf32, #tpu.memory_space<vmem>>, vector<8x128xf32>
    %8 = arith.addf %7, %6 : vector<8x128xf32>
    %c0_4 = arith.constant 0 : index
    %c0_5 = arith.constant 0 : index
    %9 = vector.load %arg4[%c0_4, %c0_5] : memref<8x128xf32, #tpu.memory_space<vmem>>, vector<8x128xf32>
    tpu.vector_store %arg4[%c0_4, %c0_5], %8 {strides = array<i32>} : memref<8x128xf32, #tpu.memory_space<vmem>>, vector<8x128xf32>,
    %c0_i32_6 = arith.constant 0 : i32
    %10 = arith.cmpi eq, %arg1, %c0_i32_6 : i32
    %11 = arith.extui %10 : i1 to i32
    %c0_i32_7 = arith.constant 0 : i32
    %12 = arith.cmpi ne, %11, %c0_i32_7 : i32
    scf.if %12 {
      %c0_8 = arith.constant 0 : index
      %c0_9 = arith.constant 0 : index
      %13 = vector.load %arg4[%c0_8, %c0_9] : memref<8x128xf32, #tpu.memory_space<vmem>>, vector<8x128xf32>
      %cst = arith.constant dense<0.000000e+00> : vector<8xf32>
      %14 = vector.multi_reduction <add>, %13, %cst [1] : vector<8x128xf32> to vector<8xf32>
      %15 = vector.shape_cast %14 : vector<8xf32> to vector<8x1xf32>
      %cst_10 = arith.constant 3.906250e-03 : f32
      %16 = vector.broadcast %cst_10 : f32 to vector<8x1xf32>
      %17 = arith.mulf %15, %16 : vector<8x1xf32>
      %c0_11 = arith.constant 0 : index
      %c0_12 = arith.constant 0 : index
      %18 = vector.load %arg3[%c0_11, %c0_12] : memref<8x1xf32, #tpu.memory_space<vmem>>, vector<8x1xf32>
      tpu.vector_store %arg3[%c0_11, %c0_12], %17 {strides = array<i32>} : memref<8x1xf32, #tpu.memory_space<vmem>>, vector<8x1xf32>,
    } else {
    }
    return
  }
  func.func @transform_0(%arg0: i32, %arg1: i32) -> (i32, i32) {
    %c0_i32 = arith.constant 0 : i32
    return %arg0, %arg1 : i32, i32
  }
  func.func @transform_1(%arg0: i32, %arg1: i32) -> (i32, i32) {
    %c0_i32 = arith.constant 0 : i32
    %c0_i32_0 = arith.constant 0 : i32
    return %arg0, %c0_i32 : i32, i32
  }
}

</mosaic_0001>

<bundles_post_ra>
// kernel: tpu_custom_call.1
= control target key start
LH: loop header
LB: loop body
LE: loop exit
PB: predicated region body
PF: predicated region fallthrough
CT: control target
= control target key end

     0   :  { %6 = vsyncpa [#allocation4], 0  ;;  %s70_s6 = smov [#allocation3]   ;;  %s96_s0 = inlined_call_operand.hbm [shape: f32[8,256], index: 0, kind: input, shape index: {}]   ;;  %s97_s1 = inlined_call_operand.vmem [shape: f32[8,1], index: 1, kind: output, shape index: {}]  }
   0x1   :  { %s13_s7 = sshll.u32 %s70_s6, 4  ;;  %s46_s10 = scalar_lea.hbm %s96_s0, 256  ;;  %s14_s7 = int_to_ptr.vmem [resolvable:$true] %s13_s7 }
   0x2   :  { %p47_p0 = scmp.ne.s32.totalorder %s96_s0, %s46_s10  ;;  %p50_p1 = scmp.lt.u32.totalorder %s46_s10, %s96_s0 }
   0x4   :  { %p52_p2 = pnand %p50_p1, %p47_p0 }
   0x6   :  { %55 = shalt.err (!%p52_p2)
}
   0x7   :  { %s56_s15 = scalar_lea.vmem %s14_s7, 256  ;;  %p61_p4 = scmp.lt.s32.totalorder %s14_s7, %s14_s7 }
   0x8   :  { %p57_p3 = scmp.ne.s32.totalorder %s14_s7, %s56_s15  ;;  %p62_p5 = scmp.lt.s32.totalorder %s56_s15, %s56_s15 }
   0xa   :  { %p63_p6 = por %p62_p5, %p61_p4 }
   0xc   :  { %p64_p7 = pnand %p63_p6, %p57_p3 }
   0xe   :  { %67 = shalt.err (!%p64_p7)
}
   0xf   :  { %16 = dma.hbm_to_vmem [thread:$0]  %s96_s0, 256, %s14_s7, [#allocation4]  }
  0x10   :  { %68 = dma.done.wait [#allocation4], 256  }
  0x11   :  { %69 = vsyncadd [#allocation4], 4294967040  ;;  %v25_v0 = vld [vmem:[#allocation3] sm:$0xff]  ;;  %v26_v1 = vld [vmem:[#allocation3 + $0x8] sm:$0xff]  ;;  %vm38_vm0 = vcmask 7168  }
  0x12   :  { %v27_v2 = vadd.f32 %v26_v1, %v25_v0 }
  0x14   :  { %35 = vadd.xlane.f32.xlu0 %v27_v2 }
  0xa1   :  { %v36_v3 = vpop.xlane.xlu0 %35 }
  0xa2   :  { %v37_v4 = vmul.f32 0.00390625, %v36_v3 }
  0xa4   :  { %39 = vst.msk [vmem:[%s97_s1] sm:$0xff] %vm38_vm0, %v37_v4 }
  0xa5   :  { %44 = vsyncpa [#allocation4], 1 }

</bundles_post_ra>
